<compile_context>
chip_gen: v5e
topology: v5e:2x2
jax: 0.10.0
libtpu: 0.0.40
codegen_flags: <defaults>
</compile_context>

<pallas_src>
import functools
import math

import jax
import jax.numpy as jnp
from jax.experimental import pallas as pl
from jax.experimental.pallas import tpu as pltpu


def lstm_recurrence_kernel(maxlen_ref, len_ref, xg_ref, whh_ref, out_ref, c_scr,
                           *, hidden, seq_len):
    """Whole LSTM recurrence in one invocation.

    maxlen_ref : (1,)      int32 SMEM  -- max(lengths) (robust to unsorted lengths)
    len_ref    : (B,H)     int32 VMEM  -- lengths, pre-broadcast over lanes
    xg_ref     : (T,B,4H)  f32   VMEM  -- x_t @ W_ih^T + (b_ih + b_hh), gate-prescaled
    whh_ref    : (H,4H)    bf16  VMEM  -- W_hh^T, gate-prescaled, resident
    out_ref    : (B,H)     f32         -- h state (accumulated in place) / final hidden
    c_scr      : (B,H)     f32   VMEM scratch -- c state
    """
    out_ref[...] = jnp.zeros_like(out_ref)          # h_0
    c_scr[...] = jnp.zeros_like(c_scr)              # c_0

    max_len = jnp.minimum(maxlen_ref[0], seq_len)

    # Hoist loop-invariant loads/broadcasts out of the unrolled recurrence.
    lengths_bh = len_ref[...]                       # (B, H) int32, already lane-broadcast
    w_hh = whh_ref[...]                             # (H, 4H) bf16, stays resident

    def step(t, carry):
        @pl.when(t < max_len)                       # skip fully-padded trailing timesteps
        def _():
            h = out_ref[...]
            c = c_scr[...]
            # Single bf16 MXU op on the serial critical path (f32 accumulate).
            gates = xg_ref[t] + jnp.dot(h.astype(jnp.bfloat16), w_hh,
                                        preferred_element_type=jnp.float32)
            # One EUP push for the whole gates block; i/f/o columns were pre-scaled
            # by 0.5 so sigmoid(x) == 0.5*(tanh(x/2) + 1) == 0.5*tg + 0.5.
            tg = jnp.tanh(gates)                    # (B, 4H)
            sg = 0.5 * tg + 0.5                     # full-block VPU fma
            i = sg[:, 0 * hidden:1 * hidden]        # PyTorch gate order: i, f, g, o
            f = sg[:, 1 * hidden:2 * hidden]
            g = tg[:, 2 * hidden:3 * hidden]
            o = sg[:, 3 * hidden:4 * hidden]

            c_new = f * c + i * g
            h_new = o * jnp.tanh(c_new)

            valid = t < lengths_bh                  # (B, H), no per-step broadcast
            out_ref[...] = jnp.where(valid, h_new, h)
            c_scr[...] = jnp.where(valid, c_new, c)
        return carry

    # Short static trip count -> fully unrolled for LLO scheduler visibility.
    jax.lax.fori_loop(0, seq_len, step, 0, unroll=True)


def transaction_lstm_forward(x, lengths, params):
    """x: (B, T, P) float32 batch_first; lengths: (B,) int.

    Returns (1, B, P) == dense(hidden[0]) for a 1-layer LSTM over a packed sequence.
    """
    B, T, P = x.shape
    H = params["w_hh"].shape[0]                     # w_hh stored transposed: (H, 4H)
    B_pad = max(8, ((B + 7) // 8) * 8)              # pad batch to a full sublane tile

    lengths_i32 = lengths.astype(jnp.int32)
    max_len = jnp.max(lengths_i32).reshape(1)       # no sorted-lengths assumption
    lengths_pad = jnp.zeros((B_pad,), jnp.int32).at[:B].set(lengths_i32)
    lengths_bh = jnp.broadcast_to(lengths_pad[:, None], (B_pad, H)).astype(jnp.int32)

    # Pre-scale i/f/o gate columns by 0.5 (tanh-only sigmoid trick); g columns untouched.
    gate_scale = jnp.concatenate([
        jnp.full((2 * H,), 0.5, jnp.float32),       # i, f
        jnp.ones((H,), jnp.float32),                # g
        jnp.full((H,), 0.5, jnp.float32),           # o
    ])
    w_ih = params["w_ih"] * gate_scale              # (P, 4H) f32
    b = params["b"] * gate_scale                    # (1, 4H) f32
    w_hh = (params["w_hh"] * gate_scale).astype(jnp.bfloat16)   # (H, 4H) bf16

    # Time-parallel input projection, hoisted out of the serial recurrence:
    # xg[t] = x[:, t] @ W_ih^T + (b_ih + b_hh), one batched XLA matmul.
    x_pad = jnp.zeros((B_pad, T, P), jnp.float32).at[:B].set(x.astype(jnp.float32))
    x_tm = jnp.transpose(x_pad, (1, 0, 2))                                   # (T, B_pad, P)
    xg = (jnp.einsum("tbp,pg->tbg", x_tm, w_ih) + b).astype(jnp.float32)     # (T, B_pad, 4H)

    kernel = functools.partial(lstm_recurrence_kernel, hidden=H, seq_len=T)
    h_final = pl.pallas_call(
        kernel,
        out_shape=jax.ShapeDtypeStruct((B_pad, H), jnp.float32),
        in_specs=[
            pl.BlockSpec(memory_space=pltpu.MemorySpace.SMEM),   # max_len (1,)
            pl.BlockSpec(memory_space=pltpu.MemorySpace.VMEM),   # lengths (B_pad, H)
            pl.BlockSpec(memory_space=pltpu.MemorySpace.VMEM),   # xg (T, B_pad, 4H) resident
            pl.BlockSpec(memory_space=pltpu.MemorySpace.VMEM),   # W_hh^T (H, 4H) bf16 resident
        ],
        out_specs=pl.BlockSpec(memory_space=pltpu.MemorySpace.VMEM),
        scratch_shapes=[pltpu.VMEM((B_pad, H), jnp.float32)],    # c state
    )(max_len, lengths_bh, xg, w_hh)

    h_final = h_final[:B]                                        # drop padded rows
    # Dense head outside the kernel (runs once; lets XLA fuse it downstream).
    out = h_final @ params["w_d"] + params["b_d"]                # (B, P)
    return out[None, :, :]                                       # (num_layers=1, B, P)


def reference_forward(x, lengths, p):
    """Pure-JAX f32 reference of the original module semantics."""
    B, T, P = x.shape
    H = p["w_hh"].shape[0]

    def step(carry, inp):
        h, c = carry
        xt, t = inp
        gates = xt @ p["w_ih"] + h @ p["w_hh"] + p["b"]
        i = jax.nn.sigmoid(gates[:, :H])
        f = jax.nn.sigmoid(gates[:, H:2 * H])
        g = jnp.tanh(gates[:, 2 * H:3 * H])
        o = jax.nn.sigmoid(gates[:, 3 * H:4 * H])
        cn = f * c + i * g
        hn = o * jnp.tanh(cn)
        valid = (t < lengths)[:, None]
        return (jnp.where(valid, hn, h), jnp.where(valid, cn, c)), None

    h0 = jnp.zeros((B, H), jnp.float32)
    c0 = jnp.zeros((B, H), jnp.float32)
    (h, _), _ = jax.lax.scan(step, (h0, c0),
                             (jnp.transpose(x, (1, 0, 2)), jnp.arange(T)))
    return (h @ p["w_d"] + p["b_d"])[None]


if __name__ == "__main__":
    # Small shapes consistent with the module: num_products=16, lstm_size=32,
    # lstm_layers=1, batch=2, seq=8.  (4H = 128 lanes exactly.)
    B, T, P, H = 2, 8, 16, 32

    key = jax.random.PRNGKey(0)
    kx, k1, k2, k3, k4, k5, k6 = jax.random.split(key, 7)
    bound = 1.0 / math.sqrt(H)

    params = {
        # nn.LSTM params (transposed for the kernel): W_ih (4H,P)->(P,4H), W_hh (4H,H)->(H,4H)
        "w_ih": jax.random.uniform(k1, (P, 4 * H), jnp.float32, -bound, bound),
        "w_hh": jax.random.uniform(k2, (H, 4 * H), jnp.float32, -bound, bound),
        "b": (jax.random.uniform(k3, (1, 4 * H), jnp.float32, -bound, bound)
              + jax.random.uniform(k4, (1, 4 * H), jnp.float32, -bound, bound)),
        # nn.Linear(lstm_size, num_products): W (P,H)->(H,P), b (P,)->(1,P)
        "w_d": jax.random.uniform(k5, (H, P), jnp.float32, -bound, bound),
        "b_d": jax.random.uniform(k6, (1, P), jnp.float32, -bound, bound),
    }

    x = jax.random.normal(kx, (B, T, P), jnp.float32)
    # pack_padded_sequence lengths, 1 <= len <= T.
    x_lengths = jnp.array([8, 5], dtype=jnp.int32)

    out = transaction_lstm_forward(x, x_lengths, params)
    out = jax.block_until_ready(out)

    ref = jax.block_until_ready(reference_forward(x, x_lengths, params))
    assert out.shape == (1, B, P), out.shape
    # Tolerance loosened for bf16 MXU operands on the recurrence matmul (expected
    # precision change, not a semantics change).
    assert jnp.allclose(out, ref, atol=5e-2, rtol=5e-2), (
        f"max abs diff {jnp.max(jnp.abs(out - ref))}")

    print("KERNEL_OK")
</pallas_src>

<mosaic_0001>
module attributes {stable_mosaic.version = 11 : i64} {
  func.func @lstm_recurrence_kernel(%arg0: memref<1xi32, #tpu.memory_space<smem>>, %arg1: memref<8x32xi32, #tpu.memory_space<vmem>>, %arg2: memref<8x8x128xf32, #tpu.memory_space<vmem>>, %arg3: memref<32x128xbf16, #tpu.memory_space<vmem>>, %arg4: memref<8x32xf32, #tpu.memory_space<vmem>>, %arg5: memref<8x32xf32, #tpu.memory_space<vmem>>) attributes {dimension_semantics = [], scalar_prefetch = 0 : i64, scratch_operands = 1 : i64, tpu.core_type = #tpu.core_type<tc>} {
    %cst = arith.constant 0.000000e+00 : f32
    %0 = vector.broadcast %cst : f32 to vector<8x32xf32>
    %c0 = arith.constant 0 : index
    %c0_0 = arith.constant 0 : index
    %1 = vector.load %arg4[%c0, %c0_0] : memref<8x32xf32, #tpu.memory_space<vmem>>, vector<8x32xf32>
    tpu.vector_store %arg4[%c0, %c0_0], %0 {strides = array<i32>} : memref<8x32xf32, #tpu.memory_space<vmem>>, vector<8x32xf32>,
    %cst_1 = arith.constant 0.000000e+00 : f32
    %2 = vector.broadcast %cst_1 : f32 to vector<8x32xf32>
    %c0_2 = arith.constant 0 : index
    %c0_3 = arith.constant 0 : index
    %3 = vector.load %arg5[%c0_2, %c0_3] : memref<8x32xf32, #tpu.memory_space<vmem>>, vector<8x32xf32>
    tpu.vector_store %arg5[%c0_2, %c0_3], %2 {strides = array<i32>} : memref<8x32xf32, #tpu.memory_space<vmem>>, vector<8x32xf32>,
    %c0_4 = arith.constant 0 : index
    %4 = memref.load %arg0[%c0_4] : memref<1xi32, #tpu.memory_space<smem>>
    %c8_i32 = arith.constant 8 : i32
    %5 = arith.minsi %4, %c8_i32 : i32
    %c0_5 = arith.constant 0 : index
    %c0_6 = arith.constant 0 : index
    %6 = vector.load %arg1[%c0_5, %c0_6] : memref<8x32xi32, #tpu.memory_space<vmem>>, vector<8x32xi32>
    %c0_7 = arith.constant 0 : index
    %c0_8 = arith.constant 0 : index
    %7 = vector.load %arg3[%c0_7, %c0_8] : memref<32x128xbf16, #tpu.memory_space<vmem>>, vector<32x128xbf16>
    %c0_i32 = arith.constant 0 : i32
    %8 = arith.cmpi slt, %c0_i32, %5 : i32
    %9 = arith.extui %8 : i1 to i32
    %c0_i32_9 = arith.constant 0 : i32
    %10 = arith.cmpi ne, %9, %c0_i32_9 : i32
    scf.if %10 {
      %c0_18 = arith.constant 0 : index
      %c0_19 = arith.constant 0 : index
      %32 = vector.load %arg4[%c0_18, %c0_19] : memref<8x32xf32, #tpu.memory_space<vmem>>, vector<8x32xf32>
      %c0_20 = arith.constant 0 : index
      %c0_21 = arith.constant 0 : index
      %33 = vector.load %arg5[%c0_20, %c0_21] : memref<8x32xf32, #tpu.memory_space<vmem>>, vector<8x32xf32>
      %34 = arith.index_cast %c0_i32 : i32 to index
      %c0_22 = arith.constant 0 : index
      %c0_23 = arith.constant 0 : index
      %35 = vector.load %arg2[%34, %c0_22, %c0_23] : memref<8x8x128xf32, #tpu.memory_space<vmem>>, vector<1x8x128xf32>
      %36 = vector.shape_cast %35 : vector<1x8x128xf32> to vector<8x128xf32>
      %37 = arith.truncf %32 : vector<8x32xf32> to vector<8x32xbf16>
      %cst_24 = arith.constant dense<0.000000e+00> : vector<8x128xf32>
      %38 = tpu.matmul %37, %7, %cst_24 {dimension_numbers = #tpu.dot_dimension_numbers<[1], [0], [0], [1], [0, 0, 1, 1], [], []>} : vector<8x32xbf16>, vector<32x128xbf16>, vector<8x128xf32> -> vector<8x128xf32>
      %39 = arith.addf %36, %38 : vector<8x128xf32>
      %40 = math.tanh %39 : vector<8x128xf32>
      %cst_25 = arith.constant 5.000000e-01 : f32
      %41 = vector.broadcast %cst_25 : f32 to vector<8x128xf32>
      %42 = arith.mulf %41, %40 : vector<8x128xf32>
      %cst_26 = arith.constant 5.000000e-01 : f32
      %43 = vector.broadcast %cst_26 : f32 to vector<8x128xf32>
      %44 = arith.addf %42, %43 : vector<8x128xf32>
      %45 = vector.extract_strided_slice %44 {offsets = [0, 0], sizes = [8, 32], strides = [1, 1]} : vector<8x128xf32> to vector<8x32xf32>
      %46 = vector.extract_strided_slice %44 {offsets = [0, 32], sizes = [8, 32], strides = [1, 1]} : vector<8x128xf32> to vector<8x32xf32>
      %47 = vector.extract_strided_slice %40 {offsets = [0, 64], sizes = [8, 32], strides = [1, 1]} : vector<8x128xf32> to vector<8x32xf32>
      %48 = vector.extract_strided_slice %44 {offsets = [0, 96], sizes = [8, 32], strides = [1, 1]} : vector<8x128xf32> to vector<8x32xf32>
      %49 = arith.mulf %46, %33 : vector<8x32xf32>
      %50 = arith.mulf %45, %47 : vector<8x32xf32>
      %51 = arith.addf %49, %50 : vector<8x32xf32>
      %52 = math.tanh %51 : vector<8x32xf32>
      %53 = arith.mulf %48, %52 : vector<8x32xf32>
      %54 = vector.broadcast %c0_i32 : i32 to vector<8x32xi32>
      %55 = arith.cmpi slt, %54, %6 : vector<8x32xi32>
      %56 = arith.select %55, %53, %32 : vector<8x32xi1>, vector<8x32xf32>
      %c0_27 = arith.constant 0 : index
      %c0_28 = arith.constant 0 : index
      %57 = vector.load %arg4[%c0_27, %c0_28] : memref<8x32xf32, #tpu.memory_space<vmem>>, vector<8x32xf32>
      tpu.vector_store %arg4[%c0_27, %c0_28], %56 {strides = array<i32>} : memref<8x32xf32, #tpu.memory_space<vmem>>, vector<8x32xf32>,
      %58 = arith.select %55, %51, %33 : vector<8x32xi1>, vector<8x32xf32>
      %c0_29 = arith.constant 0 : index
      %c0_30 = arith.constant 0 : index
      %59 = vector.load %arg5[%c0_29, %c0_30] : memref<8x32xf32, #tpu.memory_space<vmem>>, vector<8x32xf32>
      tpu.vector_store %arg5[%c0_29, %c0_30], %58 {strides = array<i32>} : memref<8x32xf32, #tpu.memory_space<vmem>>, vector<8x32xf32>,
    } else {
    }
    %c1_i32 = arith.constant 1 : i32
    %11 = arith.cmpi slt, %c1_i32, %5 : i32
    %12 = arith.extui %11 : i1 to i32
    %c0_i32_10 = arith.constant 0 : i32
    %13 = arith.cmpi ne, %12, %c0_i32_10 : i32
    scf.if %13 {
      %c0_18 = arith.constant 0 : index
      %c0_19 = arith.constant 0 : index
      %32 = vector.load %arg4[%c0_18, %c0_19] : memref<8x32xf32, #tpu.memory_space<vmem>>, vector<8x32xf32>
      %c0_20 = arith.constant 0 : index
      %c0_21 = arith.constant 0 : index
      %33 = vector.load %arg5[%c0_20, %c0_21] : memref<8x32xf32, #tpu.memory_space<vmem>>, vector<8x32xf32>
      %34 = arith.index_cast %c1_i32 : i32 to index
      %c0_22 = arith.constant 0 : index
      %c0_23 = arith.constant 0 : index
      %35 = vector.load %arg2[%34, %c0_22, %c0_23] : memref<8x8x128xf32, #tpu.memory_space<vmem>>, vector<1x8x128xf32>
      %36 = vector.shape_cast %35 : vector<1x8x128xf32> to vector<8x128xf32>
      %37 = arith.truncf %32 : vector<8x32xf32> to vector<8x32xbf16>
      %cst_24 = arith.constant dense<0.000000e+00> : vector<8x128xf32>
      %38 = tpu.matmul %37, %7, %cst_24 {dimension_numbers = #tpu.dot_dimension_numbers<[1], [0], [0], [1], [0, 0, 1, 1], [], []>} : vector<8x32xbf16>, vector<32x128xbf16>, vector<8x128xf32> -> vector<8x128xf32>
      %39 = arith.addf %36, %38 : vector<8x128xf32>
      %40 = math.tanh %39 : vector<8x128xf32>
      %cst_25 = arith.constant 5.000000e-01 : f32
      %41 = vector.broadcast %cst_25 : f32 to vector<8x128xf32>
      %42 = arith.mulf %41, %40 : vector<8x128xf32>
      %cst_26 = arith.constant 5.000000e-01 : f32
      %43 = vector.broadcast %cst_26 : f32 to vector<8x128xf32>
      %44 = arith.addf %42, %43 : vector<8x128xf32>
      %45 = vector.extract_strided_slice %44 {offsets = [0, 0], sizes = [8, 32], strides = [1, 1]} : vector<8x128xf32> to vector<8x32xf32>
      %46 = vector.extract_strided_slice %44 {offsets = [0, 32], sizes = [8, 32], strides = [1, 1]} : vector<8x128xf32> to vector<8x32xf32>
      %47 = vector.extract_strided_slice %40 {offsets = [0, 64], sizes = [8, 32], strides = [1, 1]} : vector<8x128xf32> to vector<8x32xf32>
      %48 = vector.extract_strided_slice %44 {offsets = [0, 96], sizes = [8, 32], strides = [1, 1]} : vector<8x128xf32> to vector<8x32xf32>
      %49 = arith.mulf %46, %33 : vector<8x32xf32>
      %50 = arith.mulf %45, %47 : vector<8x32xf32>
      %51 = arith.addf %49, %50 : vector<8x32xf32>
      %52 = math.tanh %51 : vector<8x32xf32>
      %53 = arith.mulf %48, %52 : vector<8x32xf32>
      %54 = vector.broadcast %c1_i32 : i32 to vector<8x32xi32>
      %55 = arith.cmpi slt, %54, %6 : vector<8x32xi32>
      %56 = arith.select %55, %53, %32 : vector<8x32xi1>, vector<8x32xf32>
      %c0_27 = arith.constant 0 : index
      %c0_28 = arith.constant 0 : index
      %57 = vector.load %arg4[%c0_27, %c0_28] : memref<8x32xf32, #tpu.memory_space<vmem>>, vector<8x32xf32>
      tpu.vector_store %arg4[%c0_27, %c0_28], %56 {strides = array<i32>} : memref<8x32xf32, #tpu.memory_space<vmem>>, vector<8x32xf32>,
      %58 = arith.select %55, %51, %33 : vector<8x32xi1>, vector<8x32xf32>
      %c0_29 = arith.constant 0 : index
      %c0_30 = arith.constant 0 : index
      %59 = vector.load %arg5[%c0_29, %c0_30] : memref<8x32xf32, #tpu.memory_space<vmem>>, vector<8x32xf32>
      tpu.vector_store %arg5[%c0_29, %c0_30], %58 {strides = array<i32>} : memref<8x32xf32, #tpu.memory_space<vmem>>, vector<8x32xf32>,
    } else {
    }
    %c2_i32 = arith.constant 2 : i32
    %14 = arith.cmpi slt, %c2_i32, %5 : i32
    %15 = arith.extui %14 : i1 to i32
    %c0_i32_11 = arith.constant 0 : i32
    %16 = arith.cmpi ne, %15, %c0_i32_11 : i32
    scf.if %16 {
      %c0_18 = arith.constant 0 : index
      %c0_19 = arith.constant 0 : index
      %32 = vector.load %arg4[%c0_18, %c0_19] : memref<8x32xf32, #tpu.memory_space<vmem>>, vector<8x32xf32>
      %c0_20 = arith.constant 0 : index
      %c0_21 = arith.constant 0 : index
      %33 = vector.load %arg5[%c0_20, %c0_21] : memref<8x32xf32, #tpu.memory_space<vmem>>, vector<8x32xf32>
      %34 = arith.index_cast %c2_i32 : i32 to index
      %c0_22 = arith.constant 0 : index
      %c0_23 = arith.constant 0 : index
      %35 = vector.load %arg2[%34, %c0_22, %c0_23] : memref<8x8x128xf32, #tpu.memory_space<vmem>>, vector<1x8x128xf32>
      %36 = vector.shape_cast %35 : vector<1x8x128xf32> to vector<8x128xf32>
      %37 = arith.truncf %32 : vector<8x32xf32> to vector<8x32xbf16>
      %cst_24 = arith.constant dense<0.000000e+00> : vector<8x128xf32>
      %38 = tpu.matmul %37, %7, %cst_24 {dimension_numbers = #tpu.dot_dimension_numbers<[1], [0], [0], [1], [0, 0, 1, 1], [], []>} : vector<8x32xbf16>, vector<32x128xbf16>, vector<8x128xf32> -> vector<8x128xf32>
      %39 = arith.addf %36, %38 : vector<8x128xf32>
      %40 = math.tanh %39 : vector<8x128xf32>
      %cst_25 = arith.constant 5.000000e-01 : f32
      %41 = vector.broadcast %cst_25 : f32 to vector<8x128xf32>
      %42 = arith.mulf %41, %40 : vector<8x128xf32>
      %cst_26 = arith.constant 5.000000e-01 : f32
      %43 = vector.broadcast %cst_26 : f32 to vector<8x128xf32>
      %44 = arith.addf %42, %43 : vector<8x128xf32>
      %45 = vector.extract_strided_slice %44 {offsets = [0, 0], sizes = [8, 32], strides = [1, 1]} : vector<8x128xf32> to vector<8x32xf32>
      %46 = vector.extract_strided_slice %44 {offsets = [0, 32], sizes = [8, 32], strides = [1, 1]} : vector<8x128xf32> to vector<8x32xf32>
      %47 = vector.extract_strided_slice %40 {offsets = [0, 64], sizes = [8, 32], strides = [1, 1]} : vector<8x128xf32> to vector<8x32xf32>
      %48 = vector.extract_strided_slice %44 {offsets = [0, 96], sizes = [8, 32], strides = [1, 1]} : vector<8x128xf32> to vector<8x32xf32>
      %49 = arith.mulf %46, %33 : vector<8x32xf32>
      %50 = arith.mulf %45, %47 : vector<8x32xf32>
      %51 = arith.addf %49, %50 : vector<8x32xf32>
      %52 = math.tanh %51 : vector<8x32xf32>
      %53 = arith.mulf %48, %52 : vector<8x32xf32>
      %54 = vector.broadcast %c2_i32 : i32 to vector<8x32xi32>
      %55 = arith.cmpi slt, %54, %6 : vector<8x32xi32>
      %56 = arith.select %55, %53, %32 : vector<8x32xi1>, vector<8x32xf32>
      %c0_27 = arith.constant 0 : index
      %c0_28 = arith.constant 0 : index
      %57 = vector.load %arg4[%c0_27, %c0_28] : memref<8x32xf32, #tpu.memory_space<vmem>>, vector<8x32xf32>
      tpu.vector_store %arg4[%c0_27, %c0_28], %56 {strides = array<i32>} : memref<8x32xf32, #tpu.memory_space<vmem>>, vector<8x32xf32>,
      %58 = arith.select %55, %51, %33 : vector<8x32xi1>, vector<8x32xf32>
      %c0_29 = arith.constant 0 : index
      %c0_30 = arith.constant 0 : index
      %59 = vector.load %arg5[%c0_29, %c0_30] : memref<8x32xf32, #tpu.memory_space<vmem>>, vector<8x32xf32>
      tpu.vector_store %arg5[%c0_29, %c0_30], %58 {strides = array<i32>} : memref<8x32xf32, #tpu.memory_space<vmem>>, vector<8x32xf32>,
    } else {
    }
    %c3_i32 = arith.constant 3 : i32
    %17 = arith.cmpi slt, %c3_i32, %5 : i32
    %18 = arith.extui %17 : i1 to i32
    %c0_i32_12 = arith.constant 0 : i32
    %19 = arith.cmpi ne, %18, %c0_i32_12 : i32
    scf.if %19 {
      %c0_18 = arith.constant 0 : index
      %c0_19 = arith.constant 0 : index
      %32 = vector.load %arg4[%c0_18, %c0_19] : memref<8x32xf32, #tpu.memory_space<vmem>>, vector<8x32xf32>
      %c0_20 = arith.constant 0 : index
      %c0_21 = arith.constant 0 : index
      %33 = vector.load %arg5[%c0_20, %c0_21] : memref<8x32xf32, #tpu.memory_space<vmem>>, vector<8x32xf32>
      %34 = arith.index_cast %c3_i32 : i32 to index
      %c0_22 = arith.constant 0 : index
      %c0_23 = arith.constant 0 : index
      %35 = vector.load %arg2[%34, %c0_22, %c0_23] : memref<8x8x128xf32, #tpu.memory_space<vmem>>, vector<1x8x128xf32>
      %36 = vector.shape_cast %35 : vector<1x8x128xf32> to vector<8x128xf32>
      %37 = arith.truncf %32 : vector<8x32xf32> to vector<8x32xbf16>
      %cst_24 = arith.constant dense<0.000000e+00> : vector<8x128xf32>
      %38 = tpu.matmul %37, %7, %cst_24 {dimension_numbers = #tpu.dot_dimension_numbers<[1], [0], [0], [1], [0, 0, 1, 1], [], []>} : vector<8x32xbf16>, vector<32x128xbf16>, vector<8x128xf32> -> vector<8x128xf32>
      %39 = arith.addf %36, %38 : vector<8x128xf32>
      %40 = math.tanh %39 : vector<8x128xf32>
      %cst_25 = arith.constant 5.000000e-01 : f32
      %41 = vector.broadcast %cst_25 : f32 to vector<8x128xf32>
      %42 = arith.mulf %41, %40 : vector<8x128xf32>
      %cst_26 = arith.constant 5.000000e-01 : f32
      %43 = vector.broadcast %cst_26 : f32 to vector<8x128xf32>
      %44 = arith.addf %42, %43 : vector<8x128xf32>
      %45 = vector.extract_strided_slice %44 {offsets = [0, 0], sizes = [8, 32], strides = [1, 1]} : vector<8x128xf32> to vector<8x32xf32>
      %46 = vector.extract_strided_slice %44 {offsets = [0, 32], sizes = [8, 32], strides = [1, 1]} : vector<8x128xf32> to vector<8x32xf32>
      %47 = vector.extract_strided_slice %40 {offsets = [0, 64], sizes = [8, 32], strides = [1, 1]} : vector<8x128xf32> to vector<8x32xf32>
      %48 = vector.extract_strided_slice %44 {offsets = [0, 96], sizes = [8, 32], strides = [1, 1]} : vector<8x128xf32> to vector<8x32xf32>
      %49 = arith.mulf %46, %33 : vector<8x32xf32>
      %50 = arith.mulf %45, %47 : vector<8x32xf32>
      %51 = arith.addf %49, %50 : vector<8x32xf32>
      %52 = math.tanh %51 : vector<8x32xf32>
      %53 = arith.mulf %48, %52 : vector<8x32xf32>
      %54 = vector.broadcast %c3_i32 : i32 to vector<8x32xi32>
      %55 = arith.cmpi slt, %54, %6 : vector<8x32xi32>
      %56 = arith.select %55, %53, %32 : vector<8x32xi1>, vector<8x32xf32>
      %c0_27 = arith.constant 0 : index
      %c0_28 = arith.constant 0 : index
      %57 = vector.load %arg4[%c0_27, %c0_28] : memref<8x32xf32, #tpu.memory_space<vmem>>, vector<8x32xf32>
      tpu.vector_store %arg4[%c0_27, %c0_28], %56 {strides = array<i32>} : memref<8x32xf32, #tpu.memory_space<vmem>>, vector<8x32xf32>,
      %58 = arith.select %55, %51, %33 : vector<8x32xi1>, vector<8x32xf32>
      %c0_29 = arith.constant 0 : index
      %c0_30 = arith.constant 0 : index
      %59 = vector.load %arg5[%c0_29, %c0_30] : memref<8x32xf32, #tpu.memory_space<vmem>>, vector<8x32xf32>
      tpu.vector_store %arg5[%c0_29, %c0_30], %58 {strides = array<i32>} : memref<8x32xf32, #tpu.memory_space<vmem>>, vector<8x32xf32>,
    } else {
    }
    %c4_i32 = arith.constant 4 : i32
    %20 = arith.cmpi slt, %c4_i32, %5 : i32
    %21 = arith.extui %20 : i1 to i32
    %c0_i32_13 = arith.constant 0 : i32
    %22 = arith.cmpi ne, %21, %c0_i32_13 : i32
    scf.if %22 {
      %c0_18 = arith.constant 0 : index
      %c0_19 = arith.constant 0 : index
      %32 = vector.load %arg4[%c0_18, %c0_19] : memref<8x32xf32, #tpu.memory_space<vmem>>, vector<8x32xf32>
      %c0_20 = arith.constant 0 : index
      %c0_21 = arith.constant 0 : index
      %33 = vector.load %arg5[%c0_20, %c0_21] : memref<8x32xf32, #tpu.memory_space<vmem>>, vector<8x32xf32>
      %34 = arith.index_cast %c4_i32 : i32 to index
      %c0_22 = arith.constant 0 : index
      %c0_23 = arith.constant 0 : index
      %35 = vector.load %arg2[%34, %c0_22, %c0_23] : memref<8x8x128xf32, #tpu.memory_space<vmem>>, vector<1x8x128xf32>
      %36 = vector.shape_cast %35 : vector<1x8x128xf32> to vector<8x128xf32>
      %37 = arith.truncf %32 : vector<8x32xf32> to vector<8x32xbf16>
      %cst_24 = arith.constant dense<0.000000e+00> : vector<8x128xf32>
      %38 = tpu.matmul %37, %7, %cst_24 {dimension_numbers = #tpu.dot_dimension_numbers<[1], [0], [0], [1], [0, 0, 1, 1], [], []>} : vector<8x32xbf16>, vector<32x128xbf16>, vector<8x128xf32> -> vector<8x128xf32>
      %39 = arith.addf %36, %38 : vector<8x128xf32>
      %40 = math.tanh %39 : vector<8x128xf32>
      %cst_25 = arith.constant 5.000000e-01 : f32
      %41 = vector.broadcast %cst_25 : f32 to vector<8x128xf32>
      %42 = arith.mulf %41, %40 : vector<8x128xf32>
      %cst_26 = arith.constant 5.000000e-01 : f32
      %43 = vector.broadcast %cst_26 : f32 to vector<8x128xf32>
      %44 = arith.addf %42, %43 : vector<8x128xf32>
      %45 = vector.extract_strided_slice %44 {offsets = [0, 0], sizes = [8, 32], strides = [1, 1]} : vector<8x128xf32> to vector<8x32xf32>
      %46 = vector.extract_strided_slice %44 {offsets = [0, 32], sizes = [8, 32], strides = [1, 1]} : vector<8x128xf32> to vector<8x32xf32>
      %47 = vector.extract_strided_slice %40 {offsets = [0, 64], sizes = [8, 32], strides = [1, 1]} : vector<8x128xf32> to vector<8x32xf32>
      %48 = vector.extract_strided_slice %44 {offsets = [0, 96], sizes = [8, 32], strides = [1, 1]} : vector<8x128xf32> to vector<8x32xf32>
      %49 = arith.mulf %46, %33 : vector<8x32xf32>
      %50 = arith.mulf %45, %47 : vector<8x32xf32>
      %51 = arith.addf %49, %50 : vector<8x32xf32>
      %52 = math.tanh %51 : vector<8x32xf32>
      %53 = arith.mulf %48, %52 : vector<8x32xf32>
      %54 = vector.broadcast %c4_i32 : i32 to vector<8x32xi32>
      %55 = arith.cmpi slt, %54, %6 : vector<8x32xi32>
      %56 = arith.select %55, %53, %32 : vector<8x32xi1>, vector<8x32xf32>
      %c0_27 = arith.constant 0 : index
      %c0_28 = arith.constant 0 : index
      %57 = vector.load %arg4[%c0_27, %c0_28] : memref<8x32xf32, #tpu.memory_space<vmem>>, vector<8x32xf32>
      tpu.vector_store %arg4[%c0_27, %c0_28], %56 {strides = array<i32>} : memref<8x32xf32, #tpu.memory_space<vmem>>, vector<8x32xf32>,
      %58 = arith.select %55, %51, %33 : vector<8x32xi1>, vector<8x32xf32>
      %c0_29 = arith.constant 0 : index
      %c0_30 = arith.constant 0 : index
      %59 = vector.load %arg5[%c0_29, %c0_30] : memref<8x32xf32, #tpu.memory_space<vmem>>, vector<8x32xf32>
      tpu.vector_store %arg5[%c0_29, %c0_30], %58 {strides = array<i32>} : memref<8x32xf32, #tpu.memory_space<vmem>>, vector<8x32xf32>,
    } else {
    }
    %c5_i32 = arith.constant 5 : i32
    %23 = arith.cmpi slt, %c5_i32, %5 : i32
    %24 = arith.extui %23 : i1 to i32
    %c0_i32_14 = arith.constant 0 : i32
    %25 = arith.cmpi ne, %24, %c0_i32_14 : i32
    scf.if %25 {
      %c0_18 = arith.constant 0 : index
      %c0_19 = arith.constant 0 : index
      %32 = vector.load %arg4[%c0_18, %c0_19] : memref<8x32xf32, #tpu.memory_space<vmem>>, vector<8x32xf32>
      %c0_20 = arith.constant 0 : index
      %c0_21 = arith.constant 0 : index
      %33 = vector.load %arg5[%c0_20, %c0_21] : memref<8x32xf32, #tpu.memory_space<vmem>>, vector<8x32xf32>
      %34 = arith.index_cast %c5_i32 : i32 to index
      %c0_22 = arith.constant 0 : index
      %c0_23 = arith.constant 0 : index
      %35 = vector.load %arg2[%34, %c0_22, %c0_23] : memref<8x8x128xf32, #tpu.memory_space<vmem>>, vector<1x8x128xf32>
      %36 = vector.shape_cast %35 : vector<1x8x128xf32> to vector<8x128xf32>
      %37 = arith.truncf %32 : vector<8x32xf32> to vector<8x32xbf16>
      %cst_24 = arith.constant dense<0.000000e+00> : vector<8x128xf32>
      %38 = tpu.matmul %37, %7, %cst_24 {dimension_numbers = #tpu.dot_dimension_numbers<[1], [0], [0], [1], [0, 0, 1, 1], [], []>} : vector<8x32xbf16>, vector<32x128xbf16>, vector<8x128xf32> -> vector<8x128xf32>
      %39 = arith.addf %36, %38 : vector<8x128xf32>
      %40 = math.tanh %39 : vector<8x128xf32>
      %cst_25 = arith.constant 5.000000e-01 : f32
      %41 = vector.broadcast %cst_25 : f32 to vector<8x128xf32>
      %42 = arith.mulf %41, %40 : vector<8x128xf32>
      %cst_26 = arith.constant 5.000000e-01 : f32
      %43 = vector.broadcast %cst_26 : f32 to vector<8x128xf32>
      %44 = arith.addf %42, %43 : vector<8x128xf32>
      %45 = vector.extract_strided_slice %44 {offsets = [0, 0], sizes = [8, 32], strides = [1, 1]} : vector<8x128xf32> to vector<8x32xf32>
      %46 = vector.extract_strided_slice %44 {offsets = [0, 32], sizes = [8, 32], strides = [1, 1]} : vector<8x128xf32> to vector<8x32xf32>
      %47 = vector.extract_strided_slice %40 {offsets = [0, 64], sizes = [8, 32], strides = [1, 1]} : vector<8x128xf32> to vector<8x32xf32>
      %48 = vector.extract_strided_slice %44 {offsets = [0, 96], sizes = [8, 32], strides = [1, 1]} : vector<8x128xf32> to vector<8x32xf32>
      %49 = arith.mulf %46, %33 : vector<8x32xf32>
      %50 = arith.mulf %45, %47 : vector<8x32xf32>
      %51 = arith.addf %49, %50 : vector<8x32xf32>
      %52 = math.tanh %51 : vector<8x32xf32>
      %53 = arith.mulf %48, %52 : vector<8x32xf32>
      %54 = vector.broadcast %c5_i32 : i32 to vector<8x32xi32>
      %55 = arith.cmpi slt, %54, %6 : vector<8x32xi32>
      %56 = arith.select %55, %53, %32 : vector<8x32xi1>, vector<8x32xf32>
      %c0_27 = arith.constant 0 : index
      %c0_28 = arith.constant 0 : index
      %57 = vector.load %arg4[%c0_27, %c0_28] : memref<8x32xf32, #tpu.memory_space<vmem>>, vector<8x32xf32>
      tpu.vector_store %arg4[%c0_27, %c0_28], %56 {strides = array<i32>} : memref<8x32xf32, #tpu.memory_space<vmem>>, vector<8x32xf32>,
      %58 = arith.select %55, %51, %33 : vector<8x32xi1>, vector<8x32xf32>
      %c0_29 = arith.constant 0 : index
      %c0_30 = arith.constant 0 : index
      %59 = vector.load %arg5[%c0_29, %c0_30] : memref<8x32xf32, #tpu.memory_space<vmem>>, vector<8x32xf32>
      tpu.vector_store %arg5[%c0_29, %c0_30], %58 {strides = array<i32>} : memref<8x32xf32, #tpu.memory_space<vmem>>, vector<8x32xf32>,
    } else {
    }
    %c6_i32 = arith.constant 6 : i32
    %26 = arith.cmpi slt, %c6_i32, %5 : i32
    %27 = arith.extui %26 : i1 to i32
    %c0_i32_15 = arith.constant 0 : i32
    %28 = arith.cmpi ne, %27, %c0_i32_15 : i32
    scf.if %28 {
      %c0_18 = arith.constant 0 : index
      %c0_19 = arith.constant 0 : index
      %32 = vector.load %arg4[%c0_18, %c0_19] : memref<8x32xf32, #tpu.memory_space<vmem>>, vector<8x32xf32>
      %c0_20 = arith.constant 0 : index
      %c0_21 = arith.constant 0 : index
      %33 = vector.load %arg5[%c0_20, %c0_21] : memref<8x32xf32, #tpu.memory_space<vmem>>, vector<8x32xf32>
      %34 = arith.index_cast %c6_i32 : i32 to index
      %c0_22 = arith.constant 0 : index
      %c0_23 = arith.constant 0 : index
      %35 = vector.load %arg2[%34, %c0_22, %c0_23] : memref<8x8x128xf32, #tpu.memory_space<vmem>>, vector<1x8x128xf32>
      %36 = vector.shape_cast %35 : vector<1x8x128xf32> to vector<8x128xf32>
      %37 = arith.truncf %32 : vector<8x32xf32> to vector<8x32xbf16>
      %cst_24 = arith.constant dense<0.000000e+00> : vector<8x128xf32>
      %38 = tpu.matmul %37, %7, %cst_24 {dimension_numbers = #tpu.dot_dimension_numbers<[1], [0], [0], [1], [0, 0, 1, 1], [], []>} : vector<8x32xbf16>, vector<32x128xbf16>, vector<8x128xf32> -> vector<8x128xf32>
      %39 = arith.addf %36, %38 : vector<8x128xf32>
      %40 = math.tanh %39 : vector<8x128xf32>
      %cst_25 = arith.constant 5.000000e-01 : f32
      %41 = vector.broadcast %cst_25 : f32 to vector<8x128xf32>
      %42 = arith.mulf %41, %40 : vector<8x128xf32>
      %cst_26 = arith.constant 5.000000e-01 : f32
      %43 = vector.broadcast %cst_26 : f32 to vector<8x128xf32>
      %44 = arith.addf %42, %43 : vector<8x128xf32>
      %45 = vector.extract_strided_slice %44 {offsets = [0, 0], sizes = [8, 32], strides = [1, 1]} : vector<8x128xf32> to vector<8x32xf32>
      %46 = vector.extract_strided_slice %44 {offsets = [0, 32], sizes = [8, 32], strides = [1, 1]} : vector<8x128xf32> to vector<8x32xf32>
      %47 = vector.extract_strided_slice %40 {offsets = [0, 64], sizes = [8, 32], strides = [1, 1]} : vector<8x128xf32> to vector<8x32xf32>
      %48 = vector.extract_strided_slice %44 {offsets = [0, 96], sizes = [8, 32], strides = [1, 1]} : vector<8x128xf32> to vector<8x32xf32>
      %49 = arith.mulf %46, %33 : vector<8x32xf32>
      %50 = arith.mulf %45, %47 : vector<8x32xf32>
      %51 = arith.addf %49, %50 : vector<8x32xf32>
      %52 = math.tanh %51 : vector<8x32xf32>
      %53 = arith.mulf %48, %52 : vector<8x32xf32>
      %54 = vector.broadcast %c6_i32 : i32 to vector<8x32xi32>
      %55 = arith.cmpi slt, %54, %6 : vector<8x32xi32>
      %56 = arith.select %55, %53, %32 : vector<8x32xi1>, vector<8x32xf32>
      %c0_27 = arith.constant 0 : index
      %c0_28 = arith.constant 0 : index
      %57 = vector.load %arg4[%c0_27, %c0_28] : memref<8x32xf32, #tpu.memory_space<vmem>>, vector<8x32xf32>
      tpu.vector_store %arg4[%c0_27, %c0_28], %56 {strides = array<i32>} : memref<8x32xf32, #tpu.memory_space<vmem>>, vector<8x32xf32>,
      %58 = arith.select %55, %51, %33 : vector<8x32xi1>, vector<8x32xf32>
      %c0_29 = arith.constant 0 : index
      %c0_30 = arith.constant 0 : index
      %59 = vector.load %arg5[%c0_29, %c0_30] : memref<8x32xf32, #tpu.memory_space<vmem>>, vector<8x32xf32>
      tpu.vector_store %arg5[%c0_29, %c0_30], %58 {strides = array<i32>} : memref<8x32xf32, #tpu.memory_space<vmem>>, vector<8x32xf32>,
    } else {
    }
    %c7_i32 = arith.constant 7 : i32
    %29 = arith.cmpi slt, %c7_i32, %5 : i32
    %30 = arith.extui %29 : i1 to i32
    %c0_i32_16 = arith.constant 0 : i32
    %31 = arith.cmpi ne, %30, %c0_i32_16 : i32
    scf.if %31 {
      %c0_18 = arith.constant 0 : index
      %c0_19 = arith.constant 0 : index
      %32 = vector.load %arg4[%c0_18, %c0_19] : memref<8x32xf32, #tpu.memory_space<vmem>>, vector<8x32xf32>
      %c0_20 = arith.constant 0 : index
      %c0_21 = arith.constant 0 : index
      %33 = vector.load %arg5[%c0_20, %c0_21] : memref<8x32xf32, #tpu.memory_space<vmem>>, vector<8x32xf32>
      %34 = arith.index_cast %c7_i32 : i32 to index
      %c0_22 = arith.constant 0 : index
      %c0_23 = arith.constant 0 : index
      %35 = vector.load %arg2[%34, %c0_22, %c0_23] : memref<8x8x128xf32, #tpu.memory_space<vmem>>, vector<1x8x128xf32>
      %36 = vector.shape_cast %35 : vector<1x8x128xf32> to vector<8x128xf32>
      %37 = arith.truncf %32 : vector<8x32xf32> to vector<8x32xbf16>
      %cst_24 = arith.constant dense<0.000000e+00> : vector<8x128xf32>
      %38 = tpu.matmul %37, %7, %cst_24 {dimension_numbers = #tpu.dot_dimension_numbers<[1], [0], [0], [1], [0, 0, 1, 1], [], []>} : vector<8x32xbf16>, vector<32x128xbf16>, vector<8x128xf32> -> vector<8x128xf32>
      %39 = arith.addf %36, %38 : vector<8x128xf32>
      %40 = math.tanh %39 : vector<8x128xf32>
      %cst_25 = arith.constant 5.000000e-01 : f32
      %41 = vector.broadcast %cst_25 : f32 to vector<8x128xf32>
      %42 = arith.mulf %41, %40 : vector<8x128xf32>
      %cst_26 = arith.constant 5.000000e-01 : f32
      %43 = vector.broadcast %cst_26 : f32 to vector<8x128xf32>
      %44 = arith.addf %42, %43 : vector<8x128xf32>
      %45 = vector.extract_strided_slice %44 {offsets = [0, 0], sizes = [8, 32], strides = [1, 1]} : vector<8x128xf32> to vector<8x32xf32>
      %46 = vector.extract_strided_slice %44 {offsets = [0, 32], sizes = [8, 32], strides = [1, 1]} : vector<8x128xf32> to vector<8x32xf32>
      %47 = vector.extract_strided_slice %40 {offsets = [0, 64], sizes = [8, 32], strides = [1, 1]} : vector<8x128xf32> to vector<8x32xf32>
      %48 = vector.extract_strided_slice %44 {offsets = [0, 96], sizes = [8, 32], strides = [1, 1]} : vector<8x128xf32> to vector<8x32xf32>
      %49 = arith.mulf %46, %33 : vector<8x32xf32>
      %50 = arith.mulf %45, %47 : vector<8x32xf32>
      %51 = arith.addf %49, %50 : vector<8x32xf32>
      %52 = math.tanh %51 : vector<8x32xf32>
      %53 = arith.mulf %48, %52 : vector<8x32xf32>
      %54 = vector.broadcast %c7_i32 : i32 to vector<8x32xi32>
      %55 = arith.cmpi slt, %54, %6 : vector<8x32xi32>
      %56 = arith.select %55, %53, %32 : vector<8x32xi1>, vector<8x32xf32>
      %c0_27 = arith.constant 0 : index
      %c0_28 = arith.constant 0 : index
      %57 = vector.load %arg4[%c0_27, %c0_28] : memref<8x32xf32, #tpu.memory_space<vmem>>, vector<8x32xf32>
      tpu.vector_store %arg4[%c0_27, %c0_28], %56 {strides = array<i32>} : memref<8x32xf32, #tpu.memory_space<vmem>>, vector<8x32xf32>,
      %58 = arith.select %55, %51, %33 : vector<8x32xi1>, vector<8x32xf32>
      %c0_29 = arith.constant 0 : index
      %c0_30 = arith.constant 0 : index
      %59 = vector.load %arg5[%c0_29, %c0_30] : memref<8x32xf32, #tpu.memory_space<vmem>>, vector<8x32xf32>
      tpu.vector_store %arg5[%c0_29, %c0_30], %58 {strides = array<i32>} : memref<8x32xf32, #tpu.memory_space<vmem>>, vector<8x32xf32>,
    } else {
    }
    %c8_i32_17 = arith.constant 8 : i32
    return
  }
}

</mosaic_0001>

<bundles_post_ra>
// kernel: tpu_custom_call.1
= control target key start
LH: loop header
LB: loop body
LE: loop exit
PB: predicated region body
PF: predicated region fallthrough
CT: control target
= control target key end

     0   :  { %10 = vsyncpa [#allocation5], 0  ;;  %s1200_s0 = inlined_call_operand.<no memory space> [shape: s32[1], index: 0, kind: input, shape index: {}]   ;;  %s1201_s1 = inlined_call_operand.hbm [shape: s32[8,32], index: 1, kind: input, shape index: {}]   ;;  %s1202_s2 = inlined_call_operand.hbm [shape: f32[8,8,128], index: 2, kind: input, shape index: {}]   ;;  %s1203_s3 = inlined_call_operand.hbm [shape: bf16[32,128], index: 3, kind: input, shape index: {}]   ;;  %s1204_s4 = inlined_call_operand.hbm [shape: f32[8,32], index: 4, kind: output, shape index: {}]  }
   0x1   :  { %11 = vsyncpa [#allocation8], 0  ;;  %s30_s17 = sshll.u32 %s1202_s2, 4  ;;  %s31_s17 = int_to_ptr.hbm [resolvable:$true] %s30_s17 }
   0x2   :  { %12 = vsyncpa [#allocation6], 0  ;;  %s988_s18 = smov [#allocation7]   ;;  %s20_s22 = sshll.u32 %s1201_s1, 4  ;;  %s21_s22 = int_to_ptr.hbm [resolvable:$true] %s20_s22 }
   0x3   :  { %s32_s19 = sshll.u32 %s988_s18, 4  ;;  %s989_s23 = smov 128   ;;  %s33_s19 = int_to_ptr.vmem [resolvable:$true] %s32_s19 }
   0x4   :  { %s990_s24 = smov 8   ;;  %s991_s25 = smov [#allocation4]  }
   0x5   :  { %38 = dma.hbm_to_vmem [thread:$0]  %s31_s17, 1024, %s33_s19, [#allocation8], %s989_s23, %s989_s23, %s990_s24  }
   0x6   :  { %s22_s26 = sshll.u32 %s991_s25, 4  ;;  %s43_s29 = sshll.u32 %s1203_s3, 4  ;;  %s23_s26 = int_to_ptr.vmem [resolvable:$true] %s22_s26  ;;  %s44_s29 = int_to_ptr.hbm [resolvable:$true] %s43_s29 }
   0x7   :  { %25 = dma.hbm_to_vmem [thread:$0]  %s21_s22, 128, %s23_s26, [#allocation5]  }
   0x8   :  { %s992_s2 = smov [#allocation9]   ;;  %s993_s5 = smov 64  }
   0x9   :  { %s45_s30 = sshll.u32 %s992_s2, 4  ;;  %s994_s6 = smov 4   ;;  %s46_s30 = int_to_ptr.vmem [resolvable:$true] %s45_s30 }
   0xa   :  { %51 = dma.hbm_to_vmem [thread:$0]  %s44_s29, 256, %s46_s30, [#allocation8], %s993_s5, %s993_s5, %s994_s6  }
   0xb   :  { %982 = dma.done.wait [#allocation5], 128  }
   0xc   :  { %983 = vsyncadd [#allocation5], 4294967168 }
   0xd   :  { %984 = dma.done.wait [#allocation8], 1280  }
   0xe   :  { %985 = vsyncadd [#allocation8], 4294966016  ;;  %vm65_vm0 = vcmask 261120   ;;  %p693_p0 = scmp.gt.s32.totalorder %s1200_s0, 0  ;;  %v995_v0 = vmov 0.0   ;;  %v1060_v1 = vld [vmem:[#allocation4] sm:$0xff] }
   0xf   :  { %66 = vst.msk [vmem:[#allocation10] sm:$0xff] %vm65_vm0, %v995_v0  ;;  %v1062_v2 = vld [vmem:[#allocation9] sm:$0xf]  ;;  %v1076_v10 = vld [vmem:[#allocation9] sm:$0xf0]  ;;  %s996_s9 = smov (%p693_p0), 64  }
  0x10   :  { %67 = vst.msk [vmem:[#allocation2] sm:$0xff] %vm65_vm0, %v995_v0  ;;  %v1064_v3 = vld [vmem:[#allocation9] sm:$0xf]  ;;  %v1078_v11 = vld [vmem:[#allocation9] sm:$0xf0]  ;;  %s997_s10 = smov (%p693_p0), 32  }
  0x11   :  { %v1066_v4 = vld [vmem:[#allocation9] sm:$0xf]  ;;  %v1080_v12 = vld [vmem:[#allocation9] sm:$0xf0]  ;;  %v1090_v18 = vld [vmem:[#allocation9 + $0x8] sm:$0xf] }
  0x12   :  { %v1068_v5 = vld [vmem:[#allocation9] sm:$0xf]  ;;  %v1082_v13 = vld [vmem:[#allocation9] sm:$0xf0]  ;;  %v1092_v19 = vld [vmem:[#allocation9 + $0x8] sm:$0xf] }
  0x13   :  { %v1070_v6 = vld [vmem:[#allocation9] sm:$0xf]  ;;  %v1084_v14 = vld [vmem:[#allocation9] sm:$0xf0]  ;;  %v1094_v20 = vld [vmem:[#allocation9 + $0x8] sm:$0xf] }
  0x14   :  { %v1072_v7 = vld [vmem:[#allocation9] sm:$0xf]  ;;  %v1086_v15 = vld [vmem:[#allocation9] sm:$0xf0]  ;;  %v1096_v21 = vld [vmem:[#allocation9 + $0x8] sm:$0xf] }
  0x15   :  { %v1074_v8 = vld [vmem:[#allocation9] sm:$0xf]  ;;  %v1088_v16 = vld [vmem:[#allocation9] sm:$0xf0]  ;;  %v1098_v22 = vld [vmem:[#allocation9 + $0x8] sm:$0xf] }
  0x16   :  { %v699_v9 = vld [vmem:[#allocation9] sm:$0xf]  ;;  %v804_v17 = vld [vmem:[#allocation9] sm:$0xf0]  ;;  %v1100_v23 = vld [vmem:[#allocation9 + $0x8] sm:$0xf] }
  0x17   :  { %v716_v24 = vld [vmem:[#allocation9 + $0x8] sm:$0xf]  ;;  %v1102_v26 = vld [vmem:[#allocation9 + $0x8] sm:$0xf0]  ;;  %v700_v35 = vor.u32 (%p693_p0), %v804_v17, %v699_v9  ;;  %v80_v36 = vld [vmem:[#allocation10] sm:$0xff] (%p693_p0)  ;;  %s998_s11 = smov (%p693_p0), 96  }
  0x18   :  { %v703_v25 = vld [vmem:[#allocation9 + $0x8] sm:$0xf]  ;;  %v1104_v27 = vld [vmem:[#allocation9 + $0x8] sm:$0xf0]  ;;  %v83_v37 = vpack.c.bf16 (%p693_p0), %v80_v36, %v80_v36  ;;  %v82_v38 = vld [vmem:[#allocation7] sm:$0xff] (%p693_p0)  ;;  %vm137_vm1 = vcmp.gt.s32.totalorder (%p693_p0), %v1060_v1, 0 }
  0x19   :  { %v1106_v28 = vld [vmem:[#allocation9 + $0x8] sm:$0xf0]  ;;  %v81_v43 = vld [vmem:[#allocation2] sm:$0xff] (%p693_p0) }
  0x1a   :  { %v1108_v29 = vld [vmem:[#allocation9 + $0x8] sm:$0xf0]  ;;  %79 = sbr.rel (!%p693_p0) target bundleno = 634 (0x27a), region = 33 }
  0x1b   :  { %v1110_v30 = vld [vmem:[#allocation9 + $0x8] sm:$0xf0] }
  0x1c   :  { %v1112_v31 = vld [vmem:[#allocation9 + $0x8] sm:$0xf0] }
  0x1d   :  { %v811_v32 = vld [vmem:[#allocation9 + $0x8] sm:$0xf0] }
  0x1e   :  { %v812_v33 = vld [vmem:[#allocation9 + $0x8] sm:$0xf0] }
  0x1f   :  { %v704_v34 = vor.u32 %v812_v33, %v703_v25 }
  0x21   :  { %105 = vmatpush.bf16.msra.mxu0 %v704_v34 }
  0x25   :  { %106 = vmatpush.bf16.msra.mxu0 %v700_v35 }
  0x28   :  { %705 = vmatmul.msk.bf16.vlgmr.msra.gmra.mxu0 %vm65_vm0, %v83_v37 }
  0xa5   :  { %v108_v39 = vpop.f32.mrf.mxu0 }
  0xa6   :  { %v112_v40 = vadd.f32 %v108_v39, %v82_v38 }
  0xa8   :  { %854 = vtanh.f32 %v112_v40 }
  0xad   :  { %v110_v41 = vpop.f32.mrf.mxu0 }
  0xae   :  { %v855_v42 = vpop.eup %854 }
  0xaf   :  { %122 = vrot.lane.b32.xlu0 %v855_v42, %s996_s9  ;;  %v114_v44 = vmul.f32 0.5, %v855_v42 }
  0xb1   :  { %v115_v45 = vadd.f32 0.5, %v114_v44 }
  0xb7   :  { %117 = vrot.lane.b32.xlu0 %v81_v43, %s997_s10 }
 0x121   :  { %v123_v46 = vpop.permute.xlu0 %122 }
 0x122   :  { %v125_v47 = vmul.f32 %v123_v46, %v115_v45 }
 0x124   :  { %127 = vrot.lane.b32.xlu1 %v125_v47, %s997_s10 }
 0x129   :  { %v118_v48 = vpop.permute.xlu0 %117 }
 0x12a   :  { %v120_v49 = vmul.f32 %v118_v48, %v115_v45 }
 0x196   :  { %v128_v50 = vpop.permute.xlu1 %127 }
 0x197   :  { %v130_v51 = vadd.f32 %v128_v50, %v120_v49 }
 0x199   :  { %856 = vtanh.f32 %v130_v51 }
 0x19f   :  { %v857_v52 = vpop.eup %856 }
 0x1a0   :  { %133 = vrot.lane.b32.xlu1 %v857_v52, %s996_s9 }
 0x212   :  { %v134_v53 = vpop.permute.xlu1 %133 }
 0x213   :  { %v136_v54 = vmul.f32 %v134_v53, %v115_v45 }
 0x215   :  { %139 = vrot.lane.b32.xlu2 %v136_v54, %s997_s10 }
 0x21d   :  { %145 = vrot.lane.b32.xlu2 %v130_v51, %s998_s11 }
 0x26f   :  { %v140_v55 = vpop.permute.xlu2 %139 }
 0x270   :  { %v142_v56 = vsel %vm137_vm1, %v140_v55, %v80_v36 }
 0x271   :  { %143 = vst.msk [vmem:[#allocation10] sm:$0xff] %vm65_vm0, %v142_v56 }
 0x277   :  { %v146_v57 = vpop.permute.xlu2 %145 }
 0x278   :  { %v148_v58 = vsel %vm137_vm1, %v146_v57, %v81_v43 }
 0x279   :  { %149 = vst.msk [vmem:[#allocation2] sm:$0xff] %vm65_vm0, %v148_v58 }
 0x27a PF:  { %p706_p1 = scmp.gt.s32.totalorder %s1200_s0, 1 }
 0x27b   :  { %v717_v59 = vor.u32 (%p706_p1), %v811_v32, %v716_v24  ;;  %v713_v60 = vor.u32 (%p706_p1), %v1088_v16, %v1074_v8  ;;  %v154_v61 = vld [vmem:[#allocation10] sm:$0xff] (%p706_p1)  ;;  %v157_v63 = vld [vmem:[#allocation7 + $0x8] sm:$0xff] (%p706_p1)  ;;  %s999_s14 = smov (%p706_p1), 64   ;;  %s1000_s15 = smov (%p706_p1), 32   ;;  %vm212_vm2 = vcmp.gt.s32.totalorder (%p706_p1), %v1060_v1, 1 }
 0x27c   :  { %153 = sbr.rel (!%p706_p1) target bundleno = 1238 (0x4d6), region = 37  ;;  %v158_v62 = vpack.c.bf16 (%p706_p1), %v154_v61, %v154_v61  ;;  %s1001_s16 = smov (%p706_p1), 96  }
 0x27d   :  { %180 = vmatpush.bf16.msra.mxu0 (%p706_p1), %v717_v59 }
 0x280   :  { %v155_v33 = vld [vmem:[#allocation2] sm:$0xff] (%p706_p1) }
 0x281   :  { %181 = vmatpush.bf16.msra.mxu0 %v713_v60 }
 0x284   :  { %718 = vmatmul.msk.bf16.vlgmr.msra.gmra.mxu0 %vm65_vm0, %v158_v62 }
 0x301   :  { %v183_v0 = vpop.f32.mrf.mxu0 }
 0x302   :  { %v187_v9 = vadd.f32 %v183_v0, %v157_v63 }
 0x304   :  { %858 = vtanh.f32 %v187_v9 }
 0x309   :  { %v185_v17 = vpop.f32.mrf.mxu0 }
 0x30a   :  { %v859_v25 = vpop.eup %858 }
 0x30b   :  { %197 = vrot.lane.b32.xlu0 %v859_v25, %s999_s14  ;;  %v189_v24 = vmul.f32 0.5, %v859_v25 }
 0x30d   :  { %v190_v32 = vadd.f32 0.5, %v189_v24 }
 0x313   :  { %192 = vrot.lane.b32.xlu0 %v155_v33, %s1000_s15 }
 0x37d   :  { %v198_v34 = vpop.permute.xlu0 %197 }
 0x37e   :  { %v200_v8 = vmul.f32 %v198_v34, %v190_v32 }
 0x380   :  { %202 = vrot.lane.b32.xlu1 %v200_v8, %s1000_s15 }
 0x385   :  { %v193_v16 = vpop.permute.xlu0 %192 }
 0x386   :  { %v195_v35 = vmul.f32 %v193_v16, %v190_v32 }
 0x3f2   :  { %v203_v36 = vpop.permute.xlu1 %202 }
 0x3f3   :  { %v205_v37 = vadd.f32 %v203_v36, %v195_v35 }
 0x3f5   :  { %860 = vtanh.f32 %v205_v37 }
 0x3fb   :  { %v861_v38 = vpop.eup %860 }
 0x3fc   :  { %208 = vrot.lane.b32.xlu1 %v861_v38, %s999_s14 }
 0x46e   :  { %v209_v39 = vpop.permute.xlu1 %208 }
 0x46f   :  { %v211_v40 = vmul.f32 %v209_v39, %v190_v32 }
 0x471   :  { %214 = vrot.lane.b32.xlu2 %v211_v40, %s1000_s15 }
 0x479   :  { %220 = vrot.lane.b32.xlu2 %v205_v37, %s1001_s16 }
 0x4cb   :  { %v215_v41 = vpop.permute.xlu2 %214 }
 0x4cc   :  { %v217_v42 = vsel %vm212_vm2, %v215_v41, %v154_v61 }
 0x4cd   :  { %218 = vst.msk [vmem:[#allocation10] sm:$0xff] %vm65_vm0, %v217_v42 }
 0x4d3   :  { %v221_v43 = vpop.permute.xlu2 %220 }
 0x4d4   :  { %v223_v44 = vsel %vm212_vm2, %v221_v43, %v155_v33 }
 0x4d5   :  { %224 = vst.msk [vmem:[#allocation2] sm:$0xff] %vm65_vm0, %v223_v44 }
 0x4d6 PF:  { %p719_p2 = scmp.gt.s32.totalorder %s1200_s0, 2 }
 0x4d7   :  { %v730_v45 = vor.u32 (%p719_p2), %v1112_v31, %v1100_v23  ;;  %v726_v46 = vor.u32 (%p719_p2), %v1086_v15, %v1072_v7  ;;  %v229_v47 = vld [vmem:[#allocation10] sm:$0xff] (%p719_p2)  ;;  %s1002_s19 = smov (%p719_p2), 64   ;;  %s1003_s20 = smov (%p719_p2), 32   ;;  %vm287_vm3 = vcmp.gt.s32.totalorder (%p719_p2), %v1060_v1, 2 }
 0x4d8   :  { %228 = sbr.rel (!%p719_p2) target bundleno = 1842 (0x732), region = 41  ;;  %v233_v48 = vpack.c.bf16 (%p719_p2), %v229_v47, %v229_v47  ;;  %v232_v49 = vld [vmem:[#allocation7 + $0x10] sm:$0xff] (%p719_p2)  ;;  %s1004_s21 = smov (%p719_p2), 96  }
 0x4d9   :  { %255 = vmatpush.bf16.msra.mxu0 (%p719_p2), %v730_v45 }
 0x4dc   :  { %v230_v54 = vld [vmem:[#allocation2] sm:$0xff] (%p719_p2) }
 0x4dd   :  { %256 = vmatpush.bf16.msra.mxu0 %v726_v46 }
 0x4e0   :  { %731 = vmatmul.msk.bf16.vlgmr.msra.gmra.mxu0 %vm65_vm0, %v233_v48 }
 0x55d   :  { %v258_v50 = vpop.f32.mrf.mxu0 }
 0x55e   :  { %v262_v51 = vadd.f32 %v258_v50, %v232_v49 }
 0x560   :  { %862 = vtanh.f32 %v262_v51 }
 0x565   :  { %v260_v52 = vpop.f32.mrf.mxu0 }
 0x566   :  { %v863_v53 = vpop.eup %862 }
 0x567   :  { %272 = vrot.lane.b32.xlu0 %v863_v53, %s1002_s19  ;;  %v264_v23 = vmul.f32 0.5, %v863_v53 }
 0x569   :  { %v265_v31 = vadd.f32 0.5, %v264_v23 }
 0x56f   :  { %267 = vrot.lane.b32.xlu0 %v230_v54, %s1003_s20 }
 0x5d9   :  { %v273_v55 = vpop.permute.xlu0 %272 }
 0x5da   :  { %v275_v7 = vmul.f32 %v273_v55, %v265_v31 }
 0x5dc   :  { %277 = vrot.lane.b32.xlu1 %v275_v7, %s1003_s20 }
 0x5e1   :  { %v268_v15 = vpop.permute.xlu0 %267 }
 0x5e2   :  { %v270_v56 = vmul.f32 %v268_v15, %v265_v31 }
 0x64e   :  { %v278_v57 = vpop.permute.xlu1 %277 }
 0x64f   :  { %v280_v58 = vadd.f32 %v278_v57, %v270_v56 }
 0x651   :  { %864 = vtanh.f32 %v280_v58 }
 0x657   :  { %v865_v59 = vpop.eup %864 }
 0x658   :  { %283 = vrot.lane.b32.xlu1 %v865_v59, %s1002_s19 }
 0x6ca   :  { %v284_v60 = vpop.permute.xlu1 %283 }
 0x6cb   :  { %v286_v61 = vmul.f32 %v284_v60, %v265_v31 }
 0x6cd   :  { %289 = vrot.lane.b32.xlu2 %v286_v61, %s1003_s20 }
 0x6d5   :  { %295 = vrot.lane.b32.xlu2 %v280_v58, %s1004_s21 }
 0x727   :  { %v290_v62 = vpop.permute.xlu2 %289 }
 0x728   :  { %v292_v63 = vsel %vm287_vm3, %v290_v62, %v229_v47 }
 0x729   :  { %293 = vst.msk [vmem:[#allocation10] sm:$0xff] %vm65_vm0, %v292_v63 }
 0x72f   :  { %v296_v0 = vpop.permute.xlu2 %295 }
 0x730   :  { %v298_v9 = vsel %vm287_vm3, %v296_v0, %v230_v54 }
 0x731   :  { %299 = vst.msk [vmem:[#allocation2] sm:$0xff] %vm65_vm0, %v298_v9 }
 0x732 PF:  { %p732_p3 = scmp.gt.s32.totalorder %s1200_s0, 3 }
 0x733   :  { %v743_v17 = vor.u32 (%p732_p3), %v1110_v30, %v1098_v22  ;;  %v739_v25 = vor.u32 (%p732_p3), %v1084_v14, %v1070_v6  ;;  %v304_v33 = vld [vmem:[#allocation10] sm:$0xff] (%p732_p3)  ;;  %v307_v32 = vld [vmem:[#allocation7 + $0x18] sm:$0xff] (%p732_p3)  ;;  %s1005_s24 = smov (%p732_p3), 64   ;;  %s1006_s25 = smov (%p732_p3), 32   ;;  %vm362_vm4 = vcmp.gt.s32.totalorder (%p732_p3), %v1060_v1, 3 }
 0x734   :  { %303 = sbr.rel (!%p732_p3) target bundleno = 2446 (0x98e), region = 45  ;;  %v308_v24 = vpack.c.bf16 (%p732_p3), %v304_v33, %v304_v33  ;;  %s1007_s26 = smov (%p732_p3), 96  }
 0x735   :  { %330 = vmatpush.bf16.msra.mxu0 (%p732_p3), %v743_v17 }
 0x738   :  { %v305_v36 = vld [vmem:[#allocation2] sm:$0xff] (%p732_p3) }
 0x739   :  { %331 = vmatpush.bf16.msra.mxu0 %v739_v25 }
 0x73c   :  { %744 = vmatmul.msk.bf16.vlgmr.msra.gmra.mxu0 %vm65_vm0, %v308_v24 }
 0x7b9   :  { %v333_v34 = vpop.f32.mrf.mxu0 }
 0x7ba   :  { %v337_v8 = vadd.f32 %v333_v34, %v307_v32 }
 0x7bc   :  { %866 = vtanh.f32 %v337_v8 }
 0x7c1   :  { %v335_v16 = vpop.f32.mrf.mxu0 }
 0x7c2   :  { %v867_v35 = vpop.eup %866 }
 0x7c3   :  { %347 = vrot.lane.b32.xlu0 %v867_v35, %s1005_s24  ;;  %v339_v22 = vmul.f32 0.5, %v867_v35 }
 0x7c5   :  { %v340_v30 = vadd.f32 0.5, %v339_v22 }
 0x7cb   :  { %342 = vrot.lane.b32.xlu0 %v305_v36, %s1006_s25 }
 0x835   :  { %v348_v37 = vpop.permute.xlu0 %347 }
 0x836   :  { %v350_v6 = vmul.f32 %v348_v37, %v340_v30 }
 0x838   :  { %352 = vrot.lane.b32.xlu1 %v350_v6, %s1006_s25 }
 0x83d   :  { %v343_v14 = vpop.permute.xlu0 %342 }
 0x83e   :  { %v345_v38 = vmul.f32 %v343_v14, %v340_v30 }
 0x8aa   :  { %v353_v39 = vpop.permute.xlu1 %352 }
 0x8ab   :  { %v355_v40 = vadd.f32 %v353_v39, %v345_v38 }
 0x8ad   :  { %868 = vtanh.f32 %v355_v40 }
 0x8b3   :  { %v869_v41 = vpop.eup %868 }
 0x8b4   :  { %358 = vrot.lane.b32.xlu1 %v869_v41, %s1005_s24 }
 0x926   :  { %v359_v42 = vpop.permute.xlu1 %358 }
 0x927   :  { %v361_v43 = vmul.f32 %v359_v42, %v340_v30 }
 0x929   :  { %364 = vrot.lane.b32.xlu2 %v361_v43, %s1006_s25 }
 0x931   :  { %370 = vrot.lane.b32.xlu2 %v355_v40, %s1007_s26 }
 0x983   :  { %v365_v44 = vpop.permute.xlu2 %364 }
 0x984   :  { %v367_v45 = vsel %vm362_vm4, %v365_v44, %v304_v33 }
 0x985   :  { %368 = vst.msk [vmem:[#allocation10] sm:$0xff] %vm65_vm0, %v367_v45 }
 0x98b   :  { %v371_v46 = vpop.permute.xlu2 %370 }
 0x98c   :  { %v373_v47 = vsel %vm362_vm4, %v371_v46, %v305_v36 }
 0x98d   :  { %374 = vst.msk [vmem:[#allocation2] sm:$0xff] %vm65_vm0, %v373_v47 }
 0x98e PF:  { %p745_p4 = scmp.gt.s32.totalorder %s1200_s0, 4 }
 0x98f   :  { %v756_v48 = vor.u32 (%p745_p4), %v1108_v29, %v1096_v21  ;;  %v752_v49 = vor.u32 (%p745_p4), %v1082_v13, %v1068_v5  ;;  %v379_v50 = vld [vmem:[#allocation10] sm:$0xff] (%p745_p4)  ;;  %v382_v52 = vld [vmem:[#allocation7 + $0x20] sm:$0xff] (%p745_p4)  ;;  %s1008_s29 = smov (%p745_p4), 64   ;;  %s1009_s2 = smov (%p745_p4), 32   ;;  %vm437_vm5 = vcmp.gt.s32.totalorder (%p745_p4), %v1060_v1, 4 }
 0x990   :  { %378 = sbr.rel (!%p745_p4) target bundleno = 3050 (0xbea), region = 49  ;;  %v383_v51 = vpack.c.bf16 (%p745_p4), %v379_v50, %v379_v50  ;;  %s1010_s30 = smov (%p745_p4), 96  }
 0x991   :  { %405 = vmatpush.bf16.msra.mxu0 (%p745_p4), %v756_v48 }
 0x994   :  { %v380_v55 = vld [vmem:[#allocation2] sm:$0xff] (%p745_p4) }
 0x995   :  { %406 = vmatpush.bf16.msra.mxu0 %v752_v49 }
 0x998   :  { %757 = vmatmul.msk.bf16.vlgmr.msra.gmra.mxu0 %vm65_vm0, %v383_v51 }
 0xa15   :  { %v408_v53 = vpop.f32.mrf.mxu0 }
 0xa16   :  { %v412_v54 = vadd.f32 %v408_v53, %v382_v52 }
 0xa18   :  { %870 = vtanh.f32 %v412_v54 }
 0xa1d   :  { %v410_v23 = vpop.f32.mrf.mxu0 }
 0xa1e   :  { %v871_v31 = vpop.eup %870 }
 0xa1f   :  { %422 = vrot.lane.b32.xlu0 %v871_v31, %s1008_s29  ;;  %v414_v21 = vmul.f32 0.5, %v871_v31 }
 0xa21   :  { %v415_v29 = vadd.f32 0.5, %v414_v21 }
 0xa27   :  { %417 = vrot.lane.b32.xlu0 %v380_v55, %s1009_s2 }
 0xa91   :  { %v423_v7 = vpop.permute.xlu0 %422 }
 0xa92   :  { %v425_v5 = vmul.f32 %v423_v7, %v415_v29 }
 0xa94   :  { %427 = vrot.lane.b32.xlu1 %v425_v5, %s1009_s2 }
 0xa99   :  { %v418_v13 = vpop.permute.xlu0 %417 }
 0xa9a   :  { %v420_v15 = vmul.f32 %v418_v13, %v415_v29 }
 0xb06   :  { %v428_v56 = vpop.permute.xlu1 %427 }
 0xb07   :  { %v430_v57 = vadd.f32 %v428_v56, %v420_v15 }
 0xb09   :  { %872 = vtanh.f32 %v430_v57 }
 0xb0f   :  { %v873_v58 = vpop.eup %872 }
 0xb10   :  { %433 = vrot.lane.b32.xlu1 %v873_v58, %s1008_s29 }
 0xb82   :  { %v434_v59 = vpop.permute.xlu1 %433 }
 0xb83   :  { %v436_v60 = vmul.f32 %v434_v59, %v415_v29 }
 0xb85   :  { %439 = vrot.lane.b32.xlu2 %v436_v60, %s1009_s2 }
 0xb8d   :  { %445 = vrot.lane.b32.xlu2 %v430_v57, %s1010_s30 }
 0xbdf   :  { %v440_v61 = vpop.permute.xlu2 %439 }
 0xbe0   :  { %v442_v62 = vsel %vm437_vm5, %v440_v61, %v379_v50 }
 0xbe1   :  { %443 = vst.msk [vmem:[#allocation10] sm:$0xff] %vm65_vm0, %v442_v62 }
 0xbe7   :  { %v446_v63 = vpop.permute.xlu2 %445 }
 0xbe8   :  { %v448_v0 = vsel %vm437_vm5, %v446_v63, %v380_v55 }
 0xbe9   :  { %449 = vst.msk [vmem:[#allocation2] sm:$0xff] %vm65_vm0, %v448_v0 }
 0xbea PF:  { %p758_p5 = scmp.gt.s32.totalorder %s1200_s0, 5 }
 0xbeb   :  { %v769_v9 = vor.u32 (%p758_p5), %v1106_v28, %v1094_v20  ;;  %v765_v17 = vor.u32 (%p758_p5), %v1080_v12, %v1066_v4  ;;  %v454_v25 = vld [vmem:[#allocation10] sm:$0xff] (%p758_p5)  ;;  %v457_v24 = vld [vmem:[#allocation7 + $0x28] sm:$0xff] (%p758_p5)  ;;  %s1011_s1 = smov (%p758_p5), 64   ;;  %s1012_s7 = smov (%p758_p5), 32   ;;  %vm512_vm6 = vcmp.gt.s32.totalorder (%p758_p5), %v1060_v1, 5 }
 0xbec   :  { %453 = sbr.rel (!%p758_p5) target bundleno = 3654 (0xe46), region = 53  ;;  %v458_v33 = vpack.c.bf16 (%p758_p5), %v454_v25, %v454_v25  ;;  %s1013_s3 = smov (%p758_p5), 96  }
 0xbed   :  { %480 = vmatpush.bf16.msra.mxu0 (%p758_p5), %v769_v9 }
 0xbf0   :  { %v455_v35 = vld [vmem:[#allocation2] sm:$0xff] (%p758_p5) }
 0xbf1   :  { %481 = vmatpush.bf16.msra.mxu0 %v765_v17 }
 0xbf4   :  { %770 = vmatmul.msk.bf16.vlgmr.msra.gmra.mxu0 %vm65_vm0, %v458_v33 }
 0xc71   :  { %v483_v32 = vpop.f32.mrf.mxu0 }
 0xc72   :  { %v487_v34 = vadd.f32 %v483_v32, %v457_v24 }
 0xc74   :  { %874 = vtanh.f32 %v487_v34 }
 0xc79   :  { %v485_v8 = vpop.f32.mrf.mxu0 }
 0xc7a   :  { %v875_v16 = vpop.eup %874 }
 0xc7b   :  { %497 = vrot.lane.b32.xlu0 %v875_v16, %s1011_s1  ;;  %v489_v20 = vmul.f32 0.5, %v875_v16 }
 0xc7d   :  { %v490_v28 = vadd.f32 0.5, %v489_v20 }
 0xc83   :  { %492 = vrot.lane.b32.xlu0 %v455_v35, %s1012_s7 }
 0xced   :  { %v498_v36 = vpop.permute.xlu0 %497 }
 0xcee   :  { %v500_v4 = vmul.f32 %v498_v36, %v490_v28 }
 0xcf0   :  { %502 = vrot.lane.b32.xlu1 %v500_v4, %s1012_s7 }
 0xcf5   :  { %v493_v12 = vpop.permute.xlu0 %492 }
 0xcf6   :  { %v495_v22 = vmul.f32 %v493_v12, %v490_v28 }
 0xd62   :  { %v503_v30 = vpop.permute.xlu1 %502 }
 0xd63   :  { %v505_v37 = vadd.f32 %v503_v30, %v495_v22 }
 0xd65   :  { %876 = vtanh.f32 %v505_v37 }
 0xd6b   :  { %v877_v6 = vpop.eup %876 }
 0xd6c   :  { %508 = vrot.lane.b32.xlu1 %v877_v6, %s1011_s1 }
 0xdde   :  { %v509_v14 = vpop.permute.xlu1 %508 }
 0xddf   :  { %v511_v38 = vmul.f32 %v509_v14, %v490_v28 }
 0xde1   :  { %514 = vrot.lane.b32.xlu2 %v511_v38, %s1012_s7 }
 0xde9   :  { %520 = vrot.lane.b32.xlu2 %v505_v37, %s1013_s3 }
 0xe3b   :  { %v515_v39 = vpop.permute.xlu2 %514 }
 0xe3c   :  { %v517_v40 = vsel %vm512_vm6, %v515_v39, %v454_v25 }
 0xe3d   :  { %518 = vst.msk [vmem:[#allocation10] sm:$0xff] %vm65_vm0, %v517_v40 }
 0xe43   :  { %v521_v41 = vpop.permute.xlu2 %520 }
 0xe44   :  { %v523_v42 = vsel %vm512_vm6, %v521_v41, %v455_v35 }
 0xe45   :  { %524 = vst.msk [vmem:[#allocation2] sm:$0xff] %vm65_vm0, %v523_v42 }
 0xe46 PF:  { %p771_p6 = scmp.gt.s32.totalorder %s1200_s0, 6 }
 0xe47   :  { %v782_v43 = vor.u32 (%p771_p6), %v1104_v27, %v1092_v19  ;;  %v778_v44 = vor.u32 (%p771_p6), %v1078_v11, %v1064_v3  ;;  %v529_v45 = vld [vmem:[#allocation10] sm:$0xff] (%p771_p6)  ;;  %s1014_s10 = smov (%p771_p6), 64   ;;  %s1015_s11 = smov (%p771_p6), 32   ;;  %vm587_vm7 = vcmp.gt.s32.totalorder (%p771_p6), %v1060_v1, 6 }
 0xe48   :  { %528 = sbr.rel (!%p771_p6) target bundleno = 4258 (0x10a2), region = 57  ;;  %v533_v46 = vpack.c.bf16 (%p771_p6), %v529_v45, %v529_v45  ;;  %v532_v47 = vld [vmem:[#allocation7 + $0x30] sm:$0xff] (%p771_p6)  ;;  %s1016_s12 = smov (%p771_p6), 96  }
 0xe49   :  { %555 = vmatpush.bf16.msra.mxu0 (%p771_p6), %v782_v43 }
 0xe4c   :  { %v530_v52 = vld [vmem:[#allocation2] sm:$0xff] (%p771_p6) }
 0xe4d   :  { %556 = vmatpush.bf16.msra.mxu0 %v778_v44 }
 0xe50   :  { %783 = vmatmul.msk.bf16.vlgmr.msra.gmra.mxu0 %vm65_vm0, %v533_v46 }
 0xecd   :  { %v558_v48 = vpop.f32.mrf.mxu0 }
 0xece   :  { %v562_v49 = vadd.f32 %v558_v48, %v532_v47 }
 0xed0   :  { %878 = vtanh.f32 %v562_v49 }
 0xed5   :  { %v560_v50 = vpop.f32.mrf.mxu0 }
 0xed6   :  { %v879_v51 = vpop.eup %878 }
 0xed7   :  { %572 = vrot.lane.b32.xlu0 %v879_v51, %s1014_s10  ;;  %v564_v19 = vmul.f32 0.5, %v879_v51 }
 0xed9   :  { %v565_v27 = vadd.f32 0.5, %v564_v19 }
 0xedf   :  { %567 = vrot.lane.b32.xlu0 %v530_v52, %s1015_s11 }
 0xf49   :  { %v573_v53 = vpop.permute.xlu0 %572 }
 0xf4a   :  { %v575_v3 = vmul.f32 %v573_v53, %v565_v27 }
 0xf4c   :  { %577 = vrot.lane.b32.xlu1 %v575_v3, %s1015_s11 }
 0xf51   :  { %v568_v11 = vpop.permute.xlu0 %567 }
 0xf52   :  { %v570_v54 = vmul.f32 %v568_v11, %v565_v27 }
 0xfbe   :  { %v578_v23 = vpop.permute.xlu1 %577 }
 0xfbf   :  { %v580_v31 = vadd.f32 %v578_v23, %v570_v54 }
 0xfc1   :  { %880 = vtanh.f32 %v580_v31 }
 0xfc7   :  { %v881_v55 = vpop.eup %880 }
 0xfc8   :  { %583 = vrot.lane.b32.xlu1 %v881_v55, %s1014_s10 }
0x103a   :  { %v584_v21 = vpop.permute.xlu1 %583 }
0x103b   :  { %v586_v29 = vmul.f32 %v584_v21, %v565_v27 }
0x103d   :  { %589 = vrot.lane.b32.xlu2 %v586_v29, %s1015_s11 }
0x1045   :  { %595 = vrot.lane.b32.xlu2 %v580_v31, %s1016_s12 }
0x1097   :  { %v590_v7 = vpop.permute.xlu2 %589 }
0x1098   :  { %v592_v5 = vsel %vm587_vm7, %v590_v7, %v529_v45 }
0x1099   :  { %593 = vst.msk [vmem:[#allocation10] sm:$0xff] %vm65_vm0, %v592_v5 }
0x109f   :  { %v596_v13 = vpop.permute.xlu2 %595 }
0x10a0   :  { %v598_v15 = vsel %vm587_vm7, %v596_v13, %v530_v52 }
0x10a1   :  { %599 = vst.msk [vmem:[#allocation2] sm:$0xff] %vm65_vm0, %v598_v15 }
0x10a2 PF:  { %p784_p7 = scmp.gt.s32.totalorder %s1200_s0, 7 }
0x10a3   :  { %v795_v56 = vor.u32 (%p784_p7), %v1102_v26, %v1090_v18  ;;  %v791_v57 = vor.u32 (%p784_p7), %v1076_v10, %v1062_v2  ;;  %v604_v58 = vld [vmem:[#allocation10] sm:$0xff] (%p784_p7)  ;;  %v607_v60 = vld [vmem:[#allocation7 + $0x38] sm:$0xff] (%p784_p7)  ;;  %s1017_s0 = smov (%p784_p7), 64   ;;  %s1018_s15 = smov (%p784_p7), 32   ;;  %vm662_vm8 = vcmp.gt.s32.totalorder (%p784_p7), %v1060_v1, 7 }
0x10a4   :  { %603 = sbr.rel (!%p784_p7) target bundleno = 4862 (0x12fe), region = 61  ;;  %v608_v59 = vpack.c.bf16 (%p784_p7), %v604_v58, %v604_v58  ;;  %s1019_s16 = smov (%p784_p7), 96  }
0x10a5   :  { %630 = vmatpush.bf16.msra.mxu0 (%p784_p7), %v795_v56 }
0x10a8   :  { %v605_v9 = vld [vmem:[#allocation2] sm:$0xff] (%p784_p7) }
0x10a9   :  { %631 = vmatpush.bf16.msra.mxu0 %v791_v57 }
0x10ac   :  { %796 = vmatmul.msk.bf16.vlgmr.msra.gmra.mxu0 %vm65_vm0, %v608_v59 }
0x1129   :  { %v633_v61 = vpop.f32.mrf.mxu0 }
0x112a   :  { %v637_v62 = vadd.f32 %v633_v61, %v607_v60 }
0x112c   :  { %882 = vtanh.f32 %v637_v62 }
0x1131   :  { %v635_v63 = vpop.f32.mrf.mxu0 }
0x1132   :  { %v883_v0 = vpop.eup %882 }
0x1133   :  { %647 = vrot.lane.b32.xlu0 %v883_v0, %s1017_s0  ;;  %v639_v18 = vmul.f32 0.5, %v883_v0 }
0x1135   :  { %v640_v26 = vadd.f32 0.5, %v639_v18 }
0x113b   :  { %642 = vrot.lane.b32.xlu0 %v605_v9, %s1018_s15 }
0x11a5   :  { %v648_v17 = vpop.permute.xlu0 %647 }
0x11a6   :  { %v650_v2 = vmul.f32 %v648_v17, %v640_v26 }
0x11a8   :  { %652 = vrot.lane.b32.xlu1 %v650_v2, %s1018_s15 }
0x11ad   :  { %v643_v10 = vpop.permute.xlu0 %642 }
0x11ae   :  { %v645_v25 = vmul.f32 %v643_v10, %v640_v26 }
0x121a   :  { %v653_v33 = vpop.permute.xlu1 %652 }
0x121b   :  { %v655_v24 = vadd.f32 %v653_v33, %v645_v25 }
0x121d   :  { %884 = vtanh.f32 %v655_v24 }
0x1223   :  { %v885_v32 = vpop.eup %884 }
0x1224   :  { %658 = vrot.lane.b32.xlu1 %v885_v32, %s1017_s0 }
0x1296   :  { %v659_v34 = vpop.permute.xlu1 %658 }
0x1297   :  { %v661_v8 = vmul.f32 %v659_v34, %v640_v26 }
0x1299   :  { %664 = vrot.lane.b32.xlu2 %v661_v8, %s1018_s15 }
0x12a1   :  { %670 = vrot.lane.b32.xlu2 %v655_v24, %s1019_s16 }
0x12f3   :  { %v665_v16 = vpop.permute.xlu2 %664 }
0x12f4   :  { %v667_v35 = vsel %vm662_vm8, %v665_v16, %v604_v58 }
0x12f5   :  { %668 = vst.msk [vmem:[#allocation10] sm:$0xff] %vm65_vm0, %v667_v35 }
0x12fb   :  { %v671_v20 = vpop.permute.xlu2 %670 }
0x12fc   :  { %v673_v28 = vsel %vm662_vm8, %v671_v20, %v605_v9 }
0x12fd   :  { %674 = vst.msk [vmem:[#allocation2] sm:$0xff] %vm65_vm0, %v673_v28 }
0x12fe PF:  { %s682_s19 = sshll.u32 %s1204_s4, 4  ;;  %s1020_s20 = smov [#allocation10]   ;;  %s683_s19 = int_to_ptr.hbm [resolvable:$true] %s682_s19 }
0x12ff   :  { %s680_s21 = sshll.u32 %s1020_s20, 4  ;;  %s681_s21 = int_to_ptr.vmem [resolvable:$true] %s680_s21 }
0x1300   :  { %685 = dma.vmem_to_hbm [thread:$0]  %s681_s21, 128, %s683_s19, [#allocation6]  }
0x1301   :  { %986 = dma.done.wait [#allocation6], 128  }
0x1302   :  { %987 = vsyncadd [#allocation6], 4294967168 }
0x1303   :  { %690 = vsyncpa [#allocation5], 1 }
0x1304   :  { %691 = vsyncpa [#allocation8], 1 }
0x1305   :  { %692 = vsyncpa [#allocation6], 1 }

</bundles_post_ra>
